<compile_context>
chip_gen: v7x
topology: tpu7x:2x2x1
jax: 0.10.0
libtpu: 0.0.40
codegen_flags: <defaults>
</compile_context>

<pallas_src>
import functools
import math

import jax
import jax.numpy as jnp
from jax import lax
from jax.experimental import pallas as pl
from jax.experimental.pallas import tpu as pltpu


# ---------------------------------------------------------------------------
# One-time, cached probe of pltpu.roll's shift convention (vs. jnp.roll), per
# axis.  On any failure we use the documented jnp.roll-compatible convention;
# we never fall back to a slow in-kernel slice+concat path.
# ---------------------------------------------------------------------------
_ROLL_MODES = None


def _roll_modes():
    global _ROLL_MODES
    if _ROLL_MODES is None:
        def classify(out, x, axis):
            if bool(jnp.array_equal(out, jnp.roll(x, 1, axis))):
                return 1
            if bool(jnp.array_equal(out, jnp.roll(x, -1, axis))):
                return -1
            return 1  # documented convention

        try:
            def probe(x_ref, a_ref, b_ref):
                a_ref[...] = pltpu.roll(x_ref[...], 1, 0)
                b_ref[...] = pltpu.roll(x_ref[...], 1, 1)

            x = jnp.arange(8 * 128, dtype=jnp.float32).reshape(8, 128)
            a, b = pl.pallas_call(
                probe,
                out_shape=(jax.ShapeDtypeStruct((8, 128), jnp.float32),
                           jax.ShapeDtypeStruct((8, 128), jnp.float32)))(x)
            _ROLL_MODES = (classify(a, x, 0), classify(b, x, 1))
        except Exception:  # pragma: no cover - conservative default
            _ROLL_MODES = (1, 1)
    return _ROLL_MODES


def _num_tensorcores():
    """Best-effort TensorCore count (1 on v5e/v6e, 2 on v7x)."""
    try:
        info = pltpu.get_tpu_info()
        for name in ("num_cores", "core_count", "num_tensorcores",
                     "tensor_core_count"):
            v = getattr(info, name, None)
            if isinstance(v, int) and v >= 1:
                return v
    except Exception:
        pass
    return 1


def _default_block_bytes():
    """Per-input block budget: ~4 MiB on v7x (fast HBM), ~2 MiB elsewhere."""
    try:
        kind = jax.devices()[0].device_kind.lower()
        if "v7" in kind:
            return 4 << 20
    except Exception:
        pass
    return 2 << 20


def _recon_kernel(x_ref, y_ref, out_ref, acc_ref, *,
                  img_h, total_rows, needs_tail_mask, roll_modes):
    """One grid step: a (tr, W) block holding whole (H, W) images, stacked."""
    step = pl.program_id(1)

    @pl.when(step == 0)
    def _init():
        acc_ref[...] = jnp.zeros_like(acc_ref)

    # Cast in-kernel; inputs are DMA'd in their native dtype.
    d = x_ref[...].astype(jnp.float32) - y_ref[...].astype(jnp.float32)
    tr, w = d.shape

    # Narrow masks (broadcast at the selects): (tr, 1) row masks, (1, w) column
    # masks.  conv2d uses zero padding, so taps outside an image are zero.
    row = lax.broadcasted_iota(jnp.int32, (tr, 1), 0)
    rim = row % img_h                      # row index within its image
    not_top = rim != 0
    not_bot = rim != img_h - 1
    col = lax.broadcasted_iota(jnp.int32, (1, w), 1)
    not_lft = col != 0
    not_rgt = col != w - 1

    if needs_tail_mask:
        # Ragged batch tail (and any block that runs past B*H rows): zero the
        # difference so phantom whole-image rows contribute exactly 0.
        blk = pl.program_id(0) * pl.num_programs(1) + step
        valid = (blk * tr + row) < total_rows
        d = jnp.where(valid, d, 0.0)

    def shifted(a, jnp_shift, axis):
        # jnp.roll-equivalent shift, via the XLU rotate (positive modded shift).
        n = a.shape[axis]
        return pltpu.roll(a, (roll_modes[axis] * jnp_shift) % n, axis)

    # Separable Sobel (cross-correlation, zero padded), applied to d = x - y
    # (Sobel is linear, so sobel(x) - sobel(y) == sobel(x - y)).
    d_up = jnp.where(not_top, shifted(d, 1, 0), 0.0)    # d[i-1, j]
    d_dn = jnp.where(not_bot, shifted(d, -1, 0), 0.0)   # d[i+1, j]

    v = d_up + 2.0 * d + d_dn                  # [1,2,1]^T vertical smooth
    g = d_dn - d_up                            # central difference along rows

    sobel_x = (jnp.where(not_rgt, shifted(v, -1, 1), 0.0)
               - jnp.where(not_lft, shifted(v, 1, 1), 0.0))
    sobel_y = (jnp.where(not_lft, shifted(g, 1, 1), 0.0)
               + 2.0 * g
               + jnp.where(not_rgt, shifted(g, -1, 1), 0.0))

    # Fused weighted contribution; single reduction tree.
    t = 0.3 * jnp.abs(d) + 0.7 * (jnp.abs(sobel_x) + jnp.abs(sobel_y))

    if tr % 8 == 0:
        acc_ref[...] = acc_ref[...] + t.reshape(tr // 8, 8, w).sum(axis=0)
    else:  # only reachable in the single whole-array-block fallback
        acc_ref[0:1, :] = acc_ref[0:1, :] + jnp.sum(t, axis=0, keepdims=True)

    # Single cross-lane/sublane reduce, once per outer ("parallel") index.
    @pl.when(step == pl.num_programs(1) - 1)
    def _fin():
        total = jnp.sum(acc_ref[...])
        r = lax.broadcasted_iota(jnp.int32, (8, 128), 0)
        c = lax.broadcasted_iota(jnp.int32, (8, 128), 1)
        out_ref[0] = jnp.where((r == 0) & (c == 0), total, 0.0).astype(out_ref.dtype)


def reconstruction_loss(x, y, *, target_block_bytes=None):
    """x, y: (B, 1, H, W) float. Returns scalar 0.3 * L1 + 0.7 * SobelLoss."""
    assert x.shape == y.shape
    B, C, H, W = x.shape
    assert C == 1, "SobelLoss conv kernel is (1,1,3,3): inputs must be single-channel"

    if target_block_bytes is None:
        target_block_bytes = _default_block_bytes()

    total_rows = B * H
    # Fold (B, 1, H, W) -> (B*H, W): free for row-major layout, lane dim = W.
    x2 = x.reshape(total_rows, W)
    y2 = y.reshape(total_rows, W)

    itemsize = x.dtype.itemsize
    bytes_per_img = H * W * itemsize
    align = 8 // math.gcd(H, 8)            # images per sublane-alignment unit
    tb_budget = max(1, target_block_bytes // bytes_per_img)

    if tb_budget >= B or align > B:
        # Whole problem (or the unaligned-small-batch corner) as a single block.
        # TODO(synk): intra-image row tiling for images larger than the budget.
        tb, n_tiles = B, 1
    else:
        tb = max(align, (tb_budget // align) * align)   # round DOWN, never 0
        n_tiles = -(-B // tb)                           # ceil(B / tb)

    tr = tb * H
    needs_tail_mask = (n_tiles * tb) != B

    nc = _num_tensorcores()
    n_core = nc if (nc > 1 and n_tiles >= nc and n_tiles % nc == 0) else 1
    n_steps = n_tiles // n_core

    block_bytes = tr * W * itemsize
    vmem_need = 4 * block_bytes + (2 << 20)             # 2 inputs x 2 buffers + slack
    vmem_limit = int(min(max(vmem_need, 16 << 20), 64 << 20))

    kernel = functools.partial(
        _recon_kernel, img_h=H, total_rows=total_rows,
        needs_tail_mask=needs_tail_mask, roll_modes=_roll_modes())

    sums = pl.pallas_call(
        kernel,
        out_shape=jax.ShapeDtypeStruct((n_core, 8, 128), jnp.float32),
        grid=(n_core, n_steps),
        in_specs=[
            pl.BlockSpec((tr, W), lambda c, s: (c * n_steps + s, 0)),
            pl.BlockSpec((tr, W), lambda c, s: (c * n_steps + s, 0)),
        ],
        out_specs=pl.BlockSpec((1, 8, 128), lambda c, s: (c, 0, 0)),
        scratch_shapes=[pltpu.VMEM((8, W), jnp.float32)],
        compiler_params=pltpu.CompilerParams(
            dimension_semantics=("parallel", "arbitrary"),
            vmem_limit_bytes=vmem_limit),
    )(x2, y2)

    n = B * C * H * W                      # element count of each mean
    return jnp.sum(sums[:, 0, 0]) / n


def _reference_loss(x, y):
    """Pure-JAX reference mirroring the PyTorch module."""
    d = (x - y).astype(jnp.float32)
    dp = jnp.pad(d, ((0, 0), (0, 0), (1, 1), (1, 1)))
    H, W = x.shape[2], x.shape[3]

    def sh(a, b):
        return dp[:, :, 1 + a:1 + a + H, 1 + b:1 + b + W]

    sx = (-sh(-1, -1) + sh(-1, 1) - 2 * sh(0, -1) + 2 * sh(0, 1)
          - sh(1, -1) + sh(1, 1))
    sy = (-sh(-1, -1) - 2 * sh(-1, 0) - sh(-1, 1)
          + sh(1, -1) + 2 * sh(1, 0) + sh(1, 1))
    return (0.3 * jnp.mean(jnp.abs(d))
            + 0.7 * (jnp.mean(jnp.abs(sx)) + jnp.mean(jnp.abs(sy))))


if __name__ == "__main__":
    key = jax.random.PRNGKey(0)
    kx, ky = jax.random.split(key)
    x = jax.random.normal(kx, (2, 1, 16, 16), dtype=jnp.float32)
    y = jax.random.normal(ky, (2, 1, 16, 16), dtype=jnp.float32)

    loss = jax.block_until_ready(reconstruction_loss(x, y))
    ref = jax.block_until_ready(_reference_loss(x, y))
    assert jnp.allclose(loss, ref, rtol=2e-5, atol=2e-5), (loss, ref)

    print("KERNEL_OK")
</pallas_src>

<mosaic_0001>
module attributes {stable_mosaic.version = 11 : i64} {
  func.func @probe(%arg0: memref<8x128xf32, #tpu.memory_space<vmem>>, %arg1: memref<8x128xf32, #tpu.memory_space<vmem>>, %arg2: memref<8x128xf32, #tpu.memory_space<vmem>>) attributes {dimension_semantics = [], scalar_prefetch = 0 : i64, scratch_operands = 0 : i64, tpu.core_type = #tpu.core_type<tc>} {
    %c0 = arith.constant 0 : index
    %c0_0 = arith.constant 0 : index
    %0 = vector.load %arg0[%c0, %c0_0] : memref<8x128xf32, #tpu.memory_space<vmem>>, vector<8x128xf32>
    %c1_i32 = arith.constant 1 : i32
    %1 = tpu.dynamic_rotate %0 by %c1_i32 dim 0 : vector<8x128xf32>, i32 -> vector<8x128xf32>
    %c0_1 = arith.constant 0 : index
    %c0_2 = arith.constant 0 : index
    %2 = vector.load %arg1[%c0_1, %c0_2] : memref<8x128xf32, #tpu.memory_space<vmem>>, vector<8x128xf32>
    tpu.vector_store %arg1[%c0_1, %c0_2], %1 {strides = array<i32>} : memref<8x128xf32, #tpu.memory_space<vmem>>, vector<8x128xf32>,
    %c0_3 = arith.constant 0 : index
    %c0_4 = arith.constant 0 : index
    %3 = vector.load %arg0[%c0_3, %c0_4] : memref<8x128xf32, #tpu.memory_space<vmem>>, vector<8x128xf32>
    %c1_i32_5 = arith.constant 1 : i32
    %4 = tpu.dynamic_rotate %3 by %c1_i32_5 dim 1 : vector<8x128xf32>, i32 -> vector<8x128xf32>
    %c0_6 = arith.constant 0 : index
    %c0_7 = arith.constant 0 : index
    %5 = vector.load %arg2[%c0_6, %c0_7] : memref<8x128xf32, #tpu.memory_space<vmem>>, vector<8x128xf32>
    tpu.vector_store %arg2[%c0_6, %c0_7], %4 {strides = array<i32>} : memref<8x128xf32, #tpu.memory_space<vmem>>, vector<8x128xf32>,
    return
  }
}

module attributes {stable_mosaic.version = 11 : i64} {
  func.func @_recon_kernel(%arg0: i32, %arg1: i32, %arg2: memref<32x16xf32, #tpu.memory_space<vmem>>, %arg3: memref<32x16xf32, #tpu.memory_space<vmem>>, %arg4: memref<1x8x128xf32, #tpu.memory_space<vmem>>, %arg5: memref<8x16xf32, #tpu.memory_space<vmem>>) attributes {dimension_semantics = [#tpu.dimension_semantics<parallel>, #tpu.dimension_semantics<arbitrary>], iteration_bounds = array<i64: 1, 1>, scalar_prefetch = 0 : i64, scratch_operands = 1 : i64, tpu.core_type = #tpu.core_type<tc>, window_params = [{transform_indices = @transform_0, window_bounds = array<i64: 32, 16>}, {transform_indices = @transform_1, window_bounds = array<i64: 32, 16>}, {transform_indices = @transform_2, window_bounds = array<i64: 1, 8, 128>}]} {
    %c0_i32 = arith.constant 0 : i32
    %0 = arith.cmpi eq, %arg1, %c0_i32 : i32
    %1 = arith.extui %0 : i1 to i32
    %c0_i32_0 = arith.constant 0 : i32
    %2 = arith.cmpi ne, %1, %c0_i32_0 : i32
    scf.if %2 {
      %cst_32 = arith.constant 0.000000e+00 : f32
      %89 = vector.broadcast %cst_32 : f32 to vector<8x16xf32>
      %c0_33 = arith.constant 0 : index
      %c0_34 = arith.constant 0 : index
      %90 = vector.load %arg5[%c0_33, %c0_34] : memref<8x16xf32, #tpu.memory_space<vmem>>, vector<8x16xf32>
      tpu.vector_store %arg5[%c0_33, %c0_34], %89 {strides = array<i32>} : memref<8x16xf32, #tpu.memory_space<vmem>>, vector<8x16xf32>,
    } else {
    }
    %c0 = arith.constant 0 : index
    %c0_1 = arith.constant 0 : index
    %3 = vector.load %arg2[%c0, %c0_1] : memref<32x16xf32, #tpu.memory_space<vmem>>, vector<32x16xf32>
    %c0_2 = arith.constant 0 : index
    %c0_3 = arith.constant 0 : index
    %4 = vector.load %arg3[%c0_2, %c0_3] : memref<32x16xf32, #tpu.memory_space<vmem>>, vector<32x16xf32>
    %5 = arith.subf %3, %4 : vector<32x16xf32>
    %6 = tpu.iota {dimensions = array<i32: 0>} : vector<32x1xi32>
    %c16_i32 = arith.constant 16 : i32
    %c0_i32_4 = arith.constant 0 : i32
    %7 = arith.cmpi eq, %c16_i32, %c0_i32_4 : i32
    %c1_i32 = arith.constant 1 : i32
    %8 = arith.select %7, %c1_i32, %c16_i32 : i32
    %9 = vector.broadcast %8 : i32 to vector<32x1xi32>
    %10 = arith.remsi %6, %9 : vector<32x1xi32>
    %c0_i32_5 = arith.constant 0 : i32
    %11 = vector.broadcast %c0_i32_5 : i32 to vector<32x1xi32>
    %12 = arith.cmpi ne, %10, %11 : vector<32x1xi32>
    %c0_i32_6 = arith.constant 0 : i32
    %13 = vector.broadcast %c0_i32_6 : i32 to vector<32x1xi32>
    %14 = arith.cmpi slt, %10, %13 : vector<32x1xi32>
    %c0_i32_7 = arith.constant 0 : i32
    %15 = arith.cmpi slt, %8, %c0_i32_7 : i32
    %16 = vector.broadcast %15 : i1 to vector<32x1xi1>
    %17 = vector.broadcast %16 : vector<32x1xi1> to vector<32x1xi1>
    %18 = arith.xori %14, %17 : vector<32x1xi1>
    %19 = arith.andi %18, %12 : vector<32x1xi1>
    %20 = vector.broadcast %8 : i32 to vector<32x1xi32>
    %21 = arith.addi %10, %20 : vector<32x1xi32>
    %22 = arith.select %19, %21, %10 : vector<32x1xi1>, vector<32x1xi32>
    %c0_i32_8 = arith.constant 0 : i32
    %23 = vector.broadcast %c0_i32_8 : i32 to vector<32x1xi32>
    %24 = arith.cmpi ne, %22, %23 : vector<32x1xi32>
    %c15_i32 = arith.constant 15 : i32
    %25 = vector.broadcast %c15_i32 : i32 to vector<32x1xi32>
    %26 = arith.cmpi ne, %22, %25 : vector<32x1xi32>
    %27 = tpu.iota {dimensions = array<i32: 1>} : vector<1x16xi32>
    %c0_i32_9 = arith.constant 0 : i32
    %28 = vector.broadcast %c0_i32_9 : i32 to vector<1x16xi32>
    %29 = arith.cmpi ne, %27, %28 : vector<1x16xi32>
    %c15_i32_10 = arith.constant 15 : i32
    %30 = vector.broadcast %c15_i32_10 : i32 to vector<1x16xi32>
    %31 = arith.cmpi ne, %27, %30 : vector<1x16xi32>
    %c1_i32_11 = arith.constant 1 : i32
    %32 = tpu.dynamic_rotate %5 by %c1_i32_11 dim 0 : vector<32x16xf32>, i32 -> vector<32x16xf32>
    %cst = arith.constant 0.000000e+00 : f32
    %33 = vector.shape_cast %24 : vector<32x1xi1> to vector<32x1xi1>
    %34 = vector.broadcast %33 : vector<32x1xi1> to vector<32x16xi1>
    %35 = vector.broadcast %cst : f32 to vector<32x16xf32>
    %36 = arith.select %34, %32, %35 : vector<32x16xi1>, vector<32x16xf32>
    %c31_i32 = arith.constant 31 : i32
    %37 = tpu.dynamic_rotate %5 by %c31_i32 dim 0 : vector<32x16xf32>, i32 -> vector<32x16xf32>
    %cst_12 = arith.constant 0.000000e+00 : f32
    %38 = vector.shape_cast %26 : vector<32x1xi1> to vector<32x1xi1>
    %39 = vector.broadcast %38 : vector<32x1xi1> to vector<32x16xi1>
    %40 = vector.broadcast %cst_12 : f32 to vector<32x16xf32>
    %41 = arith.select %39, %37, %40 : vector<32x16xi1>, vector<32x16xf32>
    %cst_13 = arith.constant 2.000000e+00 : f32
    %42 = vector.broadcast %cst_13 : f32 to vector<32x16xf32>
    %43 = arith.mulf %42, %5 : vector<32x16xf32>
    %44 = arith.addf %36, %43 : vector<32x16xf32>
    %45 = arith.addf %44, %41 : vector<32x16xf32>
    %46 = arith.subf %41, %36 : vector<32x16xf32>
    %c15_i32_14 = arith.constant 15 : i32
    %47 = tpu.dynamic_rotate %45 by %c15_i32_14 dim 1 : vector<32x16xf32>, i32 -> vector<32x16xf32>
    %cst_15 = arith.constant 0.000000e+00 : f32
    %48 = vector.shape_cast %31 : vector<1x16xi1> to vector<1x16xi1>
    %49 = vector.broadcast %48 : vector<1x16xi1> to vector<32x16xi1>
    %50 = vector.broadcast %cst_15 : f32 to vector<32x16xf32>
    %51 = arith.select %49, %47, %50 : vector<32x16xi1>, vector<32x16xf32>
    %c1_i32_16 = arith.constant 1 : i32
    %52 = tpu.dynamic_rotate %45 by %c1_i32_16 dim 1 : vector<32x16xf32>, i32 -> vector<32x16xf32>
    %cst_17 = arith.constant 0.000000e+00 : f32
    %53 = vector.shape_cast %29 : vector<1x16xi1> to vector<1x16xi1>
    %54 = vector.broadcast %53 : vector<1x16xi1> to vector<32x16xi1>
    %55 = vector.broadcast %cst_17 : f32 to vector<32x16xf32>
    %56 = arith.select %54, %52, %55 : vector<32x16xi1>, vector<32x16xf32>
    %57 = arith.subf %51, %56 : vector<32x16xf32>
    %c1_i32_18 = arith.constant 1 : i32
    %58 = tpu.dynamic_rotate %46 by %c1_i32_18 dim 1 : vector<32x16xf32>, i32 -> vector<32x16xf32>
    %cst_19 = arith.constant 0.000000e+00 : f32
    %59 = vector.shape_cast %29 : vector<1x16xi1> to vector<1x16xi1>
    %60 = vector.broadcast %59 : vector<1x16xi1> to vector<32x16xi1>
    %61 = vector.broadcast %cst_19 : f32 to vector<32x16xf32>
    %62 = arith.select %60, %58, %61 : vector<32x16xi1>, vector<32x16xf32>
    %cst_20 = arith.constant 2.000000e+00 : f32
    %63 = vector.broadcast %cst_20 : f32 to vector<32x16xf32>
    %64 = arith.mulf %63, %46 : vector<32x16xf32>
    %65 = arith.addf %62, %64 : vector<32x16xf32>
    %c15_i32_21 = arith.constant 15 : i32
    %66 = tpu.dynamic_rotate %46 by %c15_i32_21 dim 1 : vector<32x16xf32>, i32 -> vector<32x16xf32>
    %cst_22 = arith.constant 0.000000e+00 : f32
    %67 = vector.shape_cast %31 : vector<1x16xi1> to vector<1x16xi1>
    %68 = vector.broadcast %67 : vector<1x16xi1> to vector<32x16xi1>
    %69 = vector.broadcast %cst_22 : f32 to vector<32x16xf32>
    %70 = arith.select %68, %66, %69 : vector<32x16xi1>, vector<32x16xf32>
    %71 = arith.addf %65, %70 : vector<32x16xf32>
    %72 = math.absf %5 : vector<32x16xf32>
    %cst_23 = arith.constant 3.000000e-01 : f32
    %73 = vector.broadcast %cst_23 : f32 to vector<32x16xf32>
    %74 = arith.mulf %73, %72 : vector<32x16xf32>
    %75 = math.absf %57 : vector<32x16xf32>
    %76 = math.absf %71 : vector<32x16xf32>
    %77 = arith.addf %75, %76 : vector<32x16xf32>
    %cst_24 = arith.constant 0.699999988 : f32
    %78 = vector.broadcast %cst_24 : f32 to vector<32x16xf32>
    %79 = arith.mulf %78, %77 : vector<32x16xf32>
    %80 = arith.addf %74, %79 : vector<32x16xf32>
    %c0_25 = arith.constant 0 : index
    %c0_26 = arith.constant 0 : index
    %81 = vector.load %arg5[%c0_25, %c0_26] : memref<8x16xf32, #tpu.memory_space<vmem>>, vector<8x16xf32>
    %82 = vector.shape_cast %80 : vector<32x16xf32> to vector<4x8x16xf32>
    %cst_27 = arith.constant dense<0.000000e+00> : vector<8x16xf32>
    %83 = vector.multi_reduction <add>, %82, %cst_27 [0] : vector<4x8x16xf32> to vector<8x16xf32>
    %84 = arith.addf %81, %83 : vector<8x16xf32>
    %c0_28 = arith.constant 0 : index
    %c0_29 = arith.constant 0 : index
    %85 = vector.load %arg5[%c0_28, %c0_29] : memref<8x16xf32, #tpu.memory_space<vmem>>, vector<8x16xf32>
    tpu.vector_store %arg5[%c0_28, %c0_29], %84 {strides = array<i32>} : memref<8x16xf32, #tpu.memory_space<vmem>>, vector<8x16xf32>,
    %c0_i32_30 = arith.constant 0 : i32
    %86 = arith.cmpi eq, %arg1, %c0_i32_30 : i32
    %87 = arith.extui %86 : i1 to i32
    %c0_i32_31 = arith.constant 0 : i32
    %88 = arith.cmpi ne, %87, %c0_i32_31 : i32
    scf.if %88 {
      %c0_32 = arith.constant 0 : index
      %c0_33 = arith.constant 0 : index
      %89 = vector.load %arg5[%c0_32, %c0_33] : memref<8x16xf32, #tpu.memory_space<vmem>>, vector<8x16xf32>
      %90 = vector.shape_cast %89 : vector<8x16xf32> to vector<1x8x16xf32>
      %cst_34 = arith.constant dense<0.000000e+00> : vector<1xf32>
      %91 = vector.multi_reduction <add>, %90, %cst_34 [1, 2] : vector<1x8x16xf32> to vector<1xf32>
      %92 = vector.shape_cast %91 : vector<1xf32> to vector<1x1x1xf32>
      %93 = vector.extract %92[0, 0, 0] : f32 from vector<1x1x1xf32>
      %94 = tpu.iota {dimensions = array<i32: 0>} : vector<8x128xi32>
      %95 = tpu.iota {dimensions = array<i32: 1>} : vector<8x128xi32>
      %c0_i32_35 = arith.constant 0 : i32
      %96 = vector.broadcast %c0_i32_35 : i32 to vector<8x128xi32>
      %97 = arith.cmpi eq, %94, %96 : vector<8x128xi32>
      %c0_i32_36 = arith.constant 0 : i32
      %98 = vector.broadcast %c0_i32_36 : i32 to vector<8x128xi32>
      %99 = arith.cmpi eq, %95, %98 : vector<8x128xi32>
      %100 = arith.andi %97, %99 : vector<8x128xi1>
      %cst_37 = arith.constant 0.000000e+00 : f32
      %101 = vector.broadcast %93 : f32 to vector<8x128xf32>
      %102 = vector.broadcast %cst_37 : f32 to vector<8x128xf32>
      %103 = arith.select %100, %101, %102 : vector<8x128xi1>, vector<8x128xf32>
      %c0_38 = arith.constant 0 : index
      %c0_39 = arith.constant 0 : index
      %c0_40 = arith.constant 0 : index
      %104 = vector.load %arg4[%c0_38, %c0_39, %c0_40] : memref<1x8x128xf32, #tpu.memory_space<vmem>>, vector<1x8x128xf32>
      %105 = vector.shape_cast %104 : vector<1x8x128xf32> to vector<8x128xf32>
      %106 = vector.shape_cast %103 : vector<8x128xf32> to vector<1x8x128xf32>
      tpu.vector_store %arg4[%c0_38, %c0_39, %c0_40], %106 {strides = array<i32>} : memref<1x8x128xf32, #tpu.memory_space<vmem>>, vector<1x8x128xf32>,
    } else {
    }
    return
  }
  func.func @transform_0(%arg0: i32, %arg1: i32) -> (i32, i32) {
    %c1_i32 = arith.constant 1 : i32
    %0 = arith.muli %arg0, %c1_i32 : i32
    %1 = arith.addi %0, %arg1 : i32
    %c0_i32 = arith.constant 0 : i32
    %c0_i32_0 = arith.constant 0 : i32
    return %1, %c0_i32 : i32, i32
  }
  func.func @transform_1(%arg0: i32, %arg1: i32) -> (i32, i32) {
    %c1_i32 = arith.constant 1 : i32
    %0 = arith.muli %arg0, %c1_i32 : i32
    %1 = arith.addi %0, %arg1 : i32
    %c0_i32 = arith.constant 0 : i32
    %c0_i32_0 = arith.constant 0 : i32
    return %1, %c0_i32 : i32, i32
  }
  func.func @transform_2(%arg0: i32, %arg1: i32) -> (i32, i32, i32) {
    %c0_i32 = arith.constant 0 : i32
    %c0_i32_0 = arith.constant 0 : i32
    %c0_i32_1 = arith.constant 0 : i32
    return %arg0, %c0_i32, %c0_i32_0 : i32, i32, i32
  }
}

</mosaic_0001>

<bundles_post_ra>
// kernel: tpu_custom_call.1
= control target key start
LH: loop header
LB: loop body
LE: loop exit
PB: predicated region body
PF: predicated region fallthrough
CT: control target
= control target key end

     0   :  { %8 = vsyncpa [#allocation3], 0  ;;  %s191_s0 = inlined_call_operand.hbm [shape: f32[8,128], index: 0, kind: input, shape index: {}]   ;;  %s192_s1 = inlined_call_operand.hbm [shape: f32[8,128], index: 1, kind: output, shape index: {0}]   ;;  %s193_s2 = inlined_call_operand.hbm [shape: f32[8,128], index: 2, kind: output, shape index: {1}]  }
   0x1   :  { %9 = vsyncpa [#allocation4], 0 }
   0x2   :  { %10 = vsyncpa [#allocation7], 0  ;;  %s136_s9 = smov [#allocation2]   ;;  %s64_s13 = scalar_lea.hbm %s191_s0, 128 }
   0x3   :  { %s17_s10 = sshll.u32 %s136_s9, 4  ;;  %p65_p0 = scmp.ne.s32.totalorder %s191_s0, %s64_s13  ;;  %s18_s10 = int_to_ptr.vmem [resolvable:$true] %s17_s10 }
   0x4   :  { %p68_p1 = scmp.lt.u32.totalorder %s64_s13, %s191_s0 }
   0x6   :  { %p70_p2 = pnand %p68_p1, %p65_p0 }
   0x8   :  { %73 = shalt.err (!%p70_p2)
}
   0x9   :  { %s74_s18 = scalar_lea.vmem %s18_s10, 128  ;;  %p79_p4 = scmp.lt.s32.totalorder %s18_s10, %s18_s10 }
   0xa   :  { %p75_p3 = scmp.ne.s32.totalorder %s18_s10, %s74_s18  ;;  %p80_p5 = scmp.lt.s32.totalorder %s74_s18, %s74_s18 }
   0xc   :  { %p81_p6 = por %p80_p5, %p79_p4 }
   0xe   :  { %p82_p7 = pnand %p81_p6, %p75_p3 }
  0x10   :  { %85 = shalt.err (!%p82_p7)
}
  0x11   :  { %20 = dma.hbm_to_vmem [thread:$0]  %s191_s0, 128, %s18_s10, [#allocation3]  }
  0x12   :  { %130 = dma.done.wait [#allocation3], 128  }
  0x13   :  { %131 = vsyncadd [#allocation3], 4294967168  ;;  %s137_s21 = smov [#allocation5]   ;;  %v27_v0 = vld [vmem:[#allocation2] sm:$0xff]  ;;  %s138_s23 = smov 1  }
  0x14   :  { %s37_s22 = sshll.u32 %s137_s21, 4  ;;  %28 = vrot.lane.b32.xlu0 %v27_v0, %s138_s23  ;;  %v25_v1 = vrot.slane %v27_v0, 7  ;;  %s38_s22 = int_to_ptr.vmem [resolvable:$true] %s37_s22 }
  0x15   :  { %s86_s24 = scalar_lea.vmem %s38_s22, 128  ;;  %p91_p9 = scmp.lt.s32.totalorder %s38_s22, %s38_s22 }
  0x16   :  { %26 = vst [vmem:[#allocation5] sm:$0xff] %v25_v1  ;;  %p87_p8 = scmp.ne.s32.totalorder %s38_s22, %s86_s24  ;;  %p92_p10 = scmp.lt.s32.totalorder %s86_s24, %s86_s24 }
  0x18   :  { %p93_p11 = por %p92_p10, %p91_p9 }
  0x1a   :  { %p94_p12 = pnand %p93_p11, %p87_p8 }
  0x1c   :  { %97 = shalt.err (!%p94_p12)
}
  0x1d   :  { %s98_s0 = scalar_lea.hbm %s192_s1, 128 }
  0x1e   :  { %p99_p13 = scmp.ne.s32.totalorder %s192_s1, %s98_s0  ;;  %p102_p0 = scmp.lt.u32.totalorder %s98_s0, %s192_s1 }
  0x20   :  { %p104_p1 = pnand %p102_p0, %p99_p13 }
  0x22   :  { %107 = shalt.err (!%p104_p1)
}
  0x23   :  { %40 = dma.vmem_to_hbm [thread:$0]  %s38_s22, 128, %s192_s1, [#allocation4]  }
  0x24   :  { %s139_s5 = smov [#allocation6]  }
  0x25   :  { %s47_s6 = sshll.u32 %s139_s5, 4  ;;  %s48_s6 = int_to_ptr.vmem [resolvable:$true] %s47_s6 }
  0x26   :  { %s108_s7 = scalar_lea.vmem %s48_s6, 128  ;;  %p113_p3 = scmp.lt.s32.totalorder %s48_s6, %s48_s6 }
  0x27   :  { %p109_p2 = scmp.ne.s32.totalorder %s48_s6, %s108_s7  ;;  %p114_p4 = scmp.lt.s32.totalorder %s108_s7, %s108_s7 }
  0x29   :  { %p115_p5 = por %p114_p4, %p113_p3 }
  0x2b   :  { %p116_p6 = pnand %p115_p5, %p109_p2 }
  0x86   :  { %v29_v2 = vpop.permute.xlu0 %28 }
  0x87   :  { %30 = vst [vmem:[#allocation6] sm:$0xff] %v29_v2 }
  0x88   :  { %119 = shalt.err (!%p116_p6)
}
  0x89   :  { %s120_s10 = scalar_lea.hbm %s193_s2, 128 }
  0x8a   :  { %p121_p7 = scmp.ne.s32.totalorder %s193_s2, %s120_s10  ;;  %p124_p8 = scmp.lt.u32.totalorder %s120_s10, %s193_s2 }
  0x8c   :  { %p126_p9 = pnand %p124_p8, %p121_p7 }
  0x8e   :  { %129 = shalt.err (!%p126_p9)
}
  0x8f   :  { %50 = dma.vmem_to_hbm [thread:$0]  %s48_s6, 128, %s193_s2, [#allocation7]  }
  0x90   :  { %132 = dma.done.wait [#allocation4], 128  }
  0x91   :  { %133 = vsyncadd [#allocation4], 4294967168 }
  0x92   :  { %134 = dma.done.wait [#allocation7], 128  }
  0x93   :  { %135 = vsyncadd [#allocation7], 4294967168 }
  0x94   :  { %57 = vsyncpa [#allocation3], 1 }
  0x95   :  { %58 = vsyncpa [#allocation4], 1 }
  0x96   :  { %59 = vsyncpa [#allocation7], 1 }

// kernel: tpu_custom_call.1
= control target key start
LH: loop header
LB: loop body
LE: loop exit
PB: predicated region body
PF: predicated region fallthrough
CT: control target
= control target key end

     0   :  { %v74_v3 = vlaneseq  ;;  %s692_s0 = inlined_call_operand.vmem [shape: f32[32,16], index: 0, kind: input, shape index: {}]   ;;  %s693_s1 = inlined_call_operand.vmem [shape: f32[32,16], index: 1, kind: input, shape index: {}]   ;;  %s694_s2 = inlined_call_operand.hbm [shape: f32[1,8,128], index: 2, kind: output, shape index: {}]  }
   0x1   :  { %v62_v0 = vld [vmem:[%s692_s0] sm:$0xff]  ;;  %v63_v1 = vld [vmem:[%s692_s0 + $0x8] sm:$0xff]  ;;  %v65_v2 = vld [vmem:[%s692_s0 + $0x18] sm:$0xff] }
   0x2   :  { %v66_v4 = vld [vmem:[%s693_s1] sm:$0xff]  ;;  %v67_v5 = vld [vmem:[%s693_s1 + $0x8] sm:$0xff]  ;;  %v69_v6 = vld [vmem:[%s693_s1 + $0x18] sm:$0xff]  ;;  %v499_v10 = vshrl.u32 %v74_v3, 7 }
   0x3   :  { %v492_v7 = vsub.f32 %v62_v0, %v66_v4  ;;  %v494_v8 = vsub.f32 %v63_v1, %v67_v5  ;;  %v496_v9 = vsub.f32 %v65_v2, %v69_v6  ;;  %v64_v11 = vld [vmem:[%s692_s0 + $0x10] sm:$0xff] }
   0x4   :  { %v68_v12 = vld [vmem:[%s693_s1 + $0x10] sm:$0xff] }
   0x5   :  { %7 = vsyncpa [#allocation4], 0  ;;  %v507_v13 = vsub.f32 %v64_v11, %v68_v12  ;;  %v83_v14 = vand.u32 15, %v499_v10  ;;  %v139_v15 = vrot.slane %v492_v7, 7  ;;  %v142_v16 = vrot.slane %v496_v9, 7  ;;  %s454_s0 = smov 16  }
   0x6   :  { %vm143_vm0 = vcmp.lt.s32.totalorder %v499_v10, 1  ;;  %v160_v17 = vrot.slane %v492_v7, 1  ;;  %v161_v18 = vrot.slane %v494_v8, 1  ;;  %vm164_vm1 = vcmp.lt.s32.totalorder %v499_v10, 7  ;;  %s455_s1 = smov 113   ;;  %s456_s25 = smov 127  }
   0x7   :  { %v181_v19 = vmul.f32 2.0, %v492_v7  ;;  %vm127_vm2 = vcmp.ne.s32.totalorder %v83_v14, 0  ;;  %v147_v20 = vsel %vm143_vm0, %v142_v16, %v139_v15  ;;  %v76_v21 = vadd.s32 8, %v499_v10  ;;  %s458_s26 = smov [#allocation3]  }
   0x8   :  { %v140_v22 = vrot.slane %v494_v8, 7  ;;  %v156_v23 = vsel %vm127_vm2, %v147_v20, 0.0  ;;  %v167_v24 = vsel %vm164_vm1, %v160_v17, %v161_v18  ;;  %v162_v25 = vrot.slane %v507_v13, 1  ;;  %s403_s27 = sshll.u32 %s458_s26, 4  ;;  %s404_s27 = int_to_ptr.vmem [resolvable:$true] %s403_s27 }
   0x9   :  { %v182_v26 = vmul.f32 2.0, %v494_v8  ;;  %v525_v27 = vsub.f32 %v167_v24, %v156_v23  ;;  %v185_v28 = vadd.f32 %v181_v19, %v156_v23  ;;  %v90_v29 = vand.u32 15, %v76_v21  ;;  %s430_s29 = scalar_lea.vmem %s404_s27, 128  ;;  %p435_p1 = scmp.lt.s32.totalorder %s404_s27, %s404_s27 }
   0xa   :  { %v146_v30 = vsel %vm143_vm0, %v139_v15, %v140_v22  ;;  %v166_v31 = vsel %vm164_vm1, %v161_v18, %v162_v25  ;;  %v77_v33 = vadd.s32 16, %v499_v10  ;;  %v141_v34 = vrot.slane %v507_v13, 7  ;;  %p431_p0 = scmp.ne.s32.totalorder %s404_s27, %s430_s29  ;;  %p436_p2 = scmp.lt.s32.totalorder %s430_s29, %s430_s29 }
   0xb   :  { %v186_v32 = vadd.f32 %v182_v26, %v146_v30  ;;  %266 = vrot.lane.b32.xlu0 %v525_v27, %s454_s0  ;;  %v535_v35 = vadd.f32 %v185_v28, %v167_v24  ;;  %vm132_vm3 = vcmp.ne.s32.totalorder %v90_v29, 15  ;;  %v163_v36 = vrot.slane %v496_v9, 1 }
   0xc   :  { %v78_v37 = vadd.s32 24, %v499_v10  ;;  %v178_v38 = vsel %vm132_vm3, %v166_v31, 0.0  ;;  %v97_v39 = vand.u32 15, %v77_v33  ;;  %v145_v40 = vsel %vm143_vm0, %v140_v22, %v141_v34  ;;  %p437_p3 = por %p436_p2, %p435_p1 }
   0xd   :  { %198 = vrot.lane.b32.xlu1 %v535_v35, %s454_s0  ;;  %v543_v41 = vsub.f32 %v178_v38, %v146_v30  ;;  %v545_v42 = vadd.f32 %v186_v32, %v178_v38  ;;  %v165_v43 = vsel %vm164_vm1, %v162_v25, %v163_v36  ;;  %v168_v45 = vsel %vm164_vm1, %v163_v36, %v160_v17 }
   0xe   :  { %v104_v44 = vand.u32 15, %v78_v37  ;;  %vm129_vm4 = vcmp.ne.s32.totalorder %v97_v39, 0  ;;  %v183_v46 = vmul.f32 2.0, %v507_v13  ;;  %v184_v47 = vmul.f32 2.0, %v496_v9  ;;  %p438_p4 = pnand %p437_p3, %p431_p0 }
   0xf   :  { %269 = vrot.lane.b32.xlu0 %v543_v41, %s454_s0  ;;  %v158_v48 = vsel %vm129_vm4, %v145_v40, 0.0  ;;  %v144_v50 = vsel %vm143_vm0, %v141_v34, %v142_v16  ;;  %vm197_vm6 = vcmask 1047680   ;;  %vm60_vm7 = vcmask 130048  }
  0x10   :  { %vm134_vm5 = vcmp.ne.s32.totalorder %v104_v44, 15  ;;  %v555_v49 = vsub.f32 %v165_v43, %v158_v48  ;;  %v187_v52 = vadd.f32 %v183_v46, %v158_v48  ;;  %v188_v53 = vadd.f32 %v184_v47, %v144_v50 }
  0x11   :  { %v180_v51 = vsel %vm134_vm5, %v168_v45, 0.0  ;;  %201 = vrot.lane.b32.xlu1 %v545_v42, %s454_s0  ;;  %v457_v31 = vmov 0.0   ;;  %v310_v40 = vmul.f32 2.0, %v525_v27  ;;  %vm391_vm10 = vcmp.eq.s32.totalorder %v499_v10, 0 }
  0x12   :  { %v561_v54 = vadd.f32 %v187_v52, %v165_v43  ;;  %v565_v55 = vsub.f32 %v180_v51, %v144_v50  ;;  %v192_v56 = vadd.f32 %v188_v53, %v180_v51  ;;  %61 = vst.msk [vmem:[#allocation2] sm:$0xff] %vm60_vm7, %v457_v31  ;;  %v311_v43 = vmul.f32 2.0, %v543_v41 }
  0x13   :  { %272 = vrot.lane.b32.xlu0 %v555_v49, %s454_s0 }
  0x15   :  { %204 = vrot.lane.b32.xlu1 %v561_v54, %s454_s0 }
  0x17   :  { %275 = vrot.lane.b32.xlu0 %v565_v55, %s454_s0 }
  0x19   :  { %207 = vrot.lane.b32.xlu1 %v192_v56, %s454_s0 }
  0x7d   :  { %v267_v57 = vpop.permute.xlu0 %266 }
  0x7e   :  { %v268_v58 = vsel %vm197_vm6, %v267_v57, %v525_v27 }
  0x7f   :  { %278 = vrot.lane.b32.xlu0 %v268_v58, %s454_s0  ;;  %v199_v59 = vpop.permute.xlu1 %198 }
  0x80   :  { %v200_v60 = vsel %vm197_vm6, %v199_v59, %v535_v35  ;;  %v312_v59 = vmul.f32 2.0, %v555_v49 }
  0x81   :  { %v270_v61 = vpop.permute.xlu0 %269 }
  0x82   :  { %v271_v62 = vsel %vm197_vm6, %v270_v61, %v543_v41 }
  0x83   :  { %210 = vrot.lane.b32.xlu0 %v200_v60, %s454_s0  ;;  %280 = vrot.lane.b32.xlu1 %v271_v62, %s454_s0  ;;  %v202_v63 = vpop.permute.xlu1 %201 }
  0x84   :  { %v203_v0 = vsel %vm197_vm6, %v202_v63, %v545_v42 }
  0x85   :  { %v273_v1 = vpop.permute.xlu0 %272 }
  0x86   :  { %v274_v2 = vsel %vm197_vm6, %v273_v1, %v555_v49 }
  0x87   :  { %212 = vrot.lane.b32.xlu1 %v203_v0, %s454_s0  ;;  %282 = vrot.lane.b32.xlu0 %v274_v2, %s454_s0  ;;  %v205_v4 = vpop.permute.xlu1 %204 }
  0x88   :  { %v206_v5 = vsel %vm197_vm6, %v205_v4, %v561_v54 }
  0x89   :  { %v276_v6 = vpop.permute.xlu0 %275 }
  0x8a   :  { %v277_v11 = vsel %vm197_vm6, %v276_v6, %v565_v55 }
  0x8b   :  { %284 = vrot.lane.b32.xlu0 %v277_v11, %s454_s0  ;;  %214 = vrot.lane.b32.xlu1 %v206_v5, %s454_s0  ;;  %v208_v12 = vpop.permute.xlu1 %207  ;;  %v339_v11 = vand.u32 2147483647, %v494_v8 }
  0x8c   :  { %v209_v14 = vsel %vm197_vm6, %v208_v12, %v192_v56 }
  0x8f   :  { %216 = vrot.lane.b32.xlu1 %v209_v14, %s454_s0  ;;  %v338_v14 = vand.u32 2147483647, %v492_v7 }
  0xf1   :  { %v279_v15 = vpop.permute.xlu0 %278 }
  0xf2   :  { %v286_v16 = vsel %vm197_vm6, %v279_v15, %v525_v27 }
  0xf3   :  { %294 = vrot.lane.b32.xlu0 %v286_v16, %s455_s1  ;;  %318 = vrot.lane.b32.xlu1 %v286_v16, %s456_s25  ;;  %v313_v16 = vmul.f32 2.0, %v565_v55 }
  0xf5   :  { %v211_v17 = vpop.permute.xlu0 %210  ;;  %v281_v18 = vpop.permute.xlu1 %280 }
  0xf6   :  { %v218_v19 = vsel %vm197_vm6, %v211_v17, %v535_v35  ;;  %v287_v20 = vsel %vm197_vm6, %v281_v18, %v543_v41  ;;  %v628_v35 = vand.u32 127, %v74_v3 }
  0xf7   :  { %228 = vrot.lane.b32.xlu0 %v218_v19, %s456_s25  ;;  %296 = vrot.lane.b32.xlu1 %v287_v20, %s455_s1 }
  0xf8   :  { %vm137_vm8 = vcmp.ne.s32.totalorder %v628_v35, 0  ;;  %vm138_vm9 = vcmp.ne.s32.totalorder %v628_v35, 15  ;;  %vm392_vm11 = vcmp.eq.s32.totalorder %v628_v35, 0 }
  0xf9   :  { %v213_v21 = vpop.permute.xlu1 %212  ;;  %v283_v22 = vpop.permute.xlu0 %282  ;;  %vm393_vm12 = vmand %vm391_vm10, %vm392_vm11 }
  0xfa   :  { %v219_v23 = vsel %vm197_vm6, %v213_v21, %v545_v42  ;;  %v288_v24 = vsel %vm197_vm6, %v283_v22, %v555_v49  ;;  %v340_v49 = vand.u32 2147483647, %v507_v13  ;;  %v343_v22 = vmul.f32 0.3, %v339_v11 }
  0xfb   :  { %246 = vrot.lane.b32.xlu0 %v218_v19, %s455_s1  ;;  %230 = vrot.lane.b32.xlu1 %v219_v23, %s456_s25 }
  0xfc   :  { %v344_v13 = vmul.f32 0.3, %v340_v49 }
  0xfd   :  { %v285_v25 = vpop.permute.xlu0 %284  ;;  %v215_v26 = vpop.permute.xlu1 %214 }
  0xfe   :  { %v289_v28 = vsel %vm197_vm6, %v285_v25, %v565_v55  ;;  %v220_v32 = vsel %vm197_vm6, %v215_v26, %v561_v54 }
  0xff   :  { %298 = vrot.lane.b32.xlu0 %v288_v24, %s455_s1  ;;  %248 = vrot.lane.b32.xlu1 %v219_v23, %s455_s1 }
 0x101   :  { %v217_v29 = vpop.permute.xlu1 %216 }
 0x102   :  { %v221_v30 = vsel %vm197_vm6, %v217_v29, %v192_v56 }
 0x103   :  { %320 = vrot.lane.b32.xlu0 %v287_v20, %s456_s25  ;;  %300 = vrot.lane.b32.xlu1 %v289_v28, %s455_s1 }
 0x107   :  { %322 = vrot.lane.b32.xlu0 %v288_v24, %s456_s25  ;;  %234 = vrot.lane.b32.xlu1 %v221_v30, %s456_s25  ;;  %v342_v24 = vmul.f32 0.3, %v338_v14 }
 0x10b   :  { %250 = vrot.lane.b32.xlu0 %v220_v32, %s455_s1  ;;  %232 = vrot.lane.b32.xlu1 %v220_v32, %s456_s25 }
 0x10f   :  { %252 = vrot.lane.b32.xlu0 %v221_v30, %s455_s1  ;;  %324 = vrot.lane.b32.xlu1 %v289_v28, %s456_s25 }
 0x165   :  { %v295_v33 = vpop.permute.xlu0 %294  ;;  %v319_v34 = vpop.permute.xlu1 %318 }
 0x166   :  { %v306_v42 = vsel %vm137_vm8, %v295_v33, 0.0  ;;  %v330_v56 = vsel %vm138_vm9, %v319_v34, 0.0  ;;  %v341_v33 = vand.u32 2147483647, %v496_v9 }
 0x167   :  { %v314_v48 = vadd.f32 %v310_v40, %v306_v42 }
 0x169   :  { %v229_v36 = vpop.permute.xlu0 %228  ;;  %v297_v37 = vpop.permute.xlu1 %296  ;;  %v334_v58 = vadd.f32 %v330_v56, %v314_v48 }
 0x16a   :  { %v307_v46 = vsel %vm137_vm8, %v297_v37, 0.0  ;;  %v240_v27 = vsel %vm138_vm9, %v229_v36, 0.0 }
 0x16b   :  { %v315_v50 = vadd.f32 %v311_v43, %v307_v46  ;;  %v350_v5 = vand.u32 2147483647, %v334_v58 }
 0x16d   :  { %v247_v38 = vpop.permute.xlu0 %246  ;;  %v231_v39 = vpop.permute.xlu1 %230 }
 0x16e   :  { %v258_v3 = vsel %vm137_vm8, %v247_v38, 0.0  ;;  %v241_v41 = vsel %vm138_vm9, %v231_v39, 0.0 }
 0x16f   :  { %v262_v51 = vsub.f32 %v240_v27, %v258_v3  ;;  %v345_v3 = vmul.f32 0.3, %v341_v33 }
 0x171   :  { %v299_v44 = vpop.permute.xlu0 %298  ;;  %v249_v45 = vpop.permute.xlu1 %248  ;;  %v346_v62 = vand.u32 2147483647, %v262_v51 }
 0x172   :  { %v259_v47 = vsel %vm137_vm8, %v249_v45, 0.0  ;;  %v308_v61 = vsel %vm137_vm8, %v299_v44, 0.0 }
 0x173   :  { %v263_v52 = vsub.f32 %v241_v41, %v259_v47  ;;  %v316_v6 = vadd.f32 %v312_v59, %v308_v61  ;;  %v354_v15 = vadd.f32 %v350_v5, %v346_v62 }
 0x175   :  { %v321_v53 = vpop.permute.xlu0 %320  ;;  %v301_v54 = vpop.permute.xlu1 %300  ;;  %v347_v63 = vand.u32 2147483647, %v263_v52  ;;  %v358_v25 = vmul.f32 0.7, %v354_v15  ;;  %v366_v52 = vld [vmem:[#allocation2] sm:$0xff] }
 0x176   :  { %v331_v57 = vsel %vm138_vm9, %v321_v53, 0.0  ;;  %v309_v20 = vsel %vm137_vm8, %v301_v54, 0.0 }
 0x177   :  { %v335_v60 = vadd.f32 %v331_v57, %v315_v50  ;;  %v317_v26 = vadd.f32 %v313_v16, %v309_v20  ;;  %v362_v40 = vadd.f32 %v358_v25, %v342_v24 }
 0x179   :  { %v351_v0 = vand.u32 2147483647, %v335_v60  ;;  %v323_v1 = vpop.permute.xlu0 %322  ;;  %v235_v2 = vpop.permute.xlu1 %234  ;;  %v368_v48 = vsel %vm60_vm7, %v362_v40, 0.0 }
 0x17a   :  { %v332_v4 = vsel %vm138_vm9, %v323_v1, 0.0  ;;  %v243_v31 = vsel %vm138_vm9, %v235_v2, 0.0 }
 0x17b   :  { %v355_v12 = vadd.f32 %v351_v0, %v347_v63  ;;  %v336_v17 = vadd.f32 %v332_v4, %v316_v6 }
 0x17d   :  { %v251_v18 = vpop.permute.xlu0 %250  ;;  %v233_v19 = vpop.permute.xlu1 %232  ;;  %v359_v23 = vmul.f32 0.7, %v355_v12  ;;  %v352_v55 = vand.u32 2147483647, %v336_v17 }
 0x17e   :  { %v260_v21 = vsel %vm137_vm8, %v251_v18, 0.0  ;;  %v242_v8 = vsel %vm138_vm9, %v233_v19, 0.0 }
 0x17f   :  { %v264_v7 = vsub.f32 %v242_v8, %v260_v21  ;;  %v363_v36 = vadd.f32 %v359_v23, %v343_v22 }
 0x181   :  { %v348_v28 = vand.u32 2147483647, %v264_v7  ;;  %v253_v29 = vpop.permute.xlu0 %252  ;;  %v325_v30 = vpop.permute.xlu1 %324  ;;  %v369_v45 = vsel %vm60_vm7, %v363_v36, 0.0 }
 0x182   :  { %v261_v32 = vsel %vm137_vm8, %v253_v29, 0.0  ;;  %v333_v34 = vsel %vm138_vm9, %v325_v30, 0.0  ;;  %v370_v41 = vadd.f32 %v369_v45, %v368_v48 }
 0x183   :  { %v356_v37 = vadd.f32 %v352_v55, %v348_v28  ;;  %v265_v38 = vsub.f32 %v243_v31, %v261_v32  ;;  %v337_v39 = vadd.f32 %v333_v34, %v317_v26 }
 0x185   :  { %v360_v42 = vmul.f32 0.7, %v356_v37  ;;  %v349_v43 = vand.u32 2147483647, %v265_v38  ;;  %v353_v44 = vand.u32 2147483647, %v337_v39 }
 0x187   :  { %v364_v46 = vadd.f32 %v360_v42, %v344_v13  ;;  %v357_v47 = vadd.f32 %v353_v44, %v349_v43 }
 0x189   :  { %v371_v9 = vsel %vm60_vm7, %v364_v46, 0.0  ;;  %v361_v27 = vmul.f32 0.7, %v357_v47 }
 0x18a   :  { %v372_v51 = vadd.f32 %v371_v9, %v370_v41 }
 0x18b   :  { %v365_v50 = vadd.f32 %v361_v27, %v345_v3 }
 0x18d   :  { %v373_v53 = vsel %vm60_vm7, %v365_v50, 0.0 }
 0x18e   :  { %v374_v54 = vadd.f32 %v373_v53, %v372_v51 }
 0x190   :  { %v375_v56 = vadd.f32 %v374_v54, %v366_v52 }
 0x192   :  { %376 = vst.msk [vmem:[#allocation2] sm:$0xff] %vm60_vm7, %v375_v56 }
 0x199   :  { %v380_v57 = vld [vmem:[#allocation2] sm:$0xff] }
 0x19a   :  { %v381_v58 = vsel %vm60_vm7, %v380_v57, 0.0 }
 0x19b   :  { %382 = vadd.xlane.f32.xlu0 %v381_v58 }
 0x228   :  { %v383_v59 = vpop.xlane.xlu0 %382 }
 0x229   :  { %v384_v60 = vrot.slane %v383_v59, 4 }
 0x22b   :  { %v385_v61 = vadd.f32 %v384_v60, %v383_v59 }
 0x22d   :  { %v386_v62 = vrot.slane %v385_v61, 2 }
 0x22f   :  { %v387_v63 = vadd.f32 %v386_v62, %v385_v61 }
 0x231   :  { %v388_v0 = vrot.slane %v387_v63, 1 }
 0x233   :  { %v389_v1 = vadd.f32 %v388_v0, %v387_v63 }
 0x235   :  { %423 = vpush %v389_v1 }
 0x266   :  { %s424_s28 = spop %423 }
 0x267   :  { %v394_v2 = vstv %s424_s28 }
 0x268   :  { %v395_v4 = vsel %vm393_vm12, %v394_v2, 0.0 }
 0x269   :  { %396 = vst [vmem:[#allocation3] sm:$0xff] %v395_v4 }
 0x26a   :  { %441 = shalt.err (!%p438_p4)
}
 0x26b   :  { %s442_s4 = scalar_lea.hbm %s694_s2, 128 }
 0x26c   :  { %p443_p5 = scmp.ne.s32.totalorder %s694_s2, %s442_s4  ;;  %p446_p6 = scmp.lt.u32.totalorder %s442_s4, %s694_s2 }
 0x26e   :  { %p448_p7 = pnand %p446_p6, %p443_p5 }
 0x270   :  { %451 = shalt.err (!%p448_p7)
}
 0x271   :  { %406 = dma.vmem_to_hbm [thread:$0]  %s404_s27, 128, %s694_s2, [#allocation4]  }
 0x272   :  { %452 = dma.done.wait [#allocation4], 128  }
 0x273   :  { %453 = vsyncadd [#allocation4], 4294967168 }
 0x274   :  { %410 = vsyncpa [#allocation4], 1 }

</bundles_post_ra>
